<compile_context>
chip_gen: v5e
topology: v5e:2x2
jax: 0.10.0
libtpu: 0.0.40
codegen_flags: <defaults>
</compile_context>

<pallas_src>
import jax
import jax.numpy as jnp
from jax.experimental import pallas as pl
from jax.experimental.pallas import tpu as pltpu


def fused_linear_kernel(x_ref, w_ref, b_ref, o_ref):
    # In-kernel x.float(): VPU cast hidden under the MXU matmul.  W/b are f32,
    # accumulation is f32 -> numerics match the PyTorch reference.
    x = x_ref[...].astype(jnp.float32)
    o_ref[...] = (
        jnp.dot(x, w_ref[...], preferred_element_type=jnp.float32) + b_ref[...]
    )


def _vmem_limit_bytes():
    # 64 MiB scoped budget on v5e/v6e (128 MiB physical), 32 MiB on v7x
    # (64 MiB physical).  Conservative 32 MiB fallback if the query fails.
    try:
        cap = int(pltpu.get_tpu_info().vmem_capacity_bytes)
        return int(min(cap // 2, 64 * 1024 * 1024))
    except Exception:
        return 32 * 1024 * 1024


def net_task1_forward(x, w1, b1, w2, b2, *, block_b=2048, min_pallas_rows=256):
    """x: (B, in_num); w1: (20, in_num); b1: (20,); w2: (out_num, 20); b2: (out_num,)."""
    B, in_num = x.shape
    out_num = w2.shape[0]

    # ---- Algebraic fusion of the two Linear layers (constant-folded under jit
    #      when weights are constants; otherwise a couple of tiny XLA matmuls).
    w1f = jnp.asarray(w1, jnp.float32)
    w2f = jnp.asarray(w2, jnp.float32)
    b1f = jnp.asarray(b1, jnp.float32)
    b2f = jnp.asarray(b2, jnp.float32)
    w_fused = w1f.T @ w2f.T                              # (in_num, out_num)
    b_fused = (b1f @ w2f.T + b2f).reshape(1, out_num)    # (1, out_num)

    # ---- Tiny problems: pallas_call launch/pipeline overhead dwarfs the work.
    if B < min_pallas_rows:
        return x.astype(jnp.float32) @ w_fused + b_fused

    # ---- Batch tile selection ------------------------------------------------
    # Multiple of 8 sublanes; capped at cdiv(B, 2) so the "parallel" grid has
    # >=2 tiles (keeps both v7x TensorCores busy); clamped so double-buffered
    # x / y tiles plus the resident weights stay inside the scoped-VMEM budget.
    vmem_limit = _vmem_limit_bytes()
    x_row_bytes = in_num * jnp.dtype(x.dtype).itemsize
    y_row_bytes = out_num * 4
    resident_bytes = 2 * (in_num * out_num * 4 + out_num * 4)   # W + b (2 bufs)
    budget = max(vmem_limit - resident_bytes - (4 << 20), 1 << 20)
    max_tb = budget // (2 * (x_row_bytes + y_row_bytes))        # 2 = double buffer
    # TODO(synk): for very large in_num, add a K grid axis + f32 VMEM accumulator
    # (P3) instead of keeping the full (in_num, out_num) fused weight resident.

    tb = min(block_b, (pl.cdiv(B, 2) + 7) // 8 * 8, max_tb)
    tb = max(8, (int(tb) // 8) * 8)

    grid = (pl.cdiv(B, tb),)   # ragged last block handled by Pallas masking

    return pl.pallas_call(
        fused_linear_kernel,
        out_shape=jax.ShapeDtypeStruct((B, out_num), jnp.float32),
        grid=grid,
        in_specs=[
            pl.BlockSpec((tb, in_num), lambda i: (i, 0)),        # x: streamed per tile
            pl.BlockSpec((in_num, out_num), lambda i: (0, 0)),   # fused W: resident
            pl.BlockSpec((1, out_num), lambda i: (0, 0)),        # fused bias: resident
        ],
        out_specs=pl.BlockSpec((tb, out_num), lambda i: (i, 0)),
        compiler_params=pltpu.CompilerParams(
            dimension_semantics=("parallel",),   # megacore sharding on v7x
            vmem_limit_bytes=vmem_limit,
        ),
    )(x, w_fused, b_fused)


def reference_forward(x, w1, b1, w2, b2):
    xf = x.astype(jnp.float32)
    h = xf @ w1.T + b1
    return h @ w2.T + b2


if __name__ == "__main__":
    key = jax.random.PRNGKey(0)
    k_x, k_w1, k_b1, k_w2, k_b2 = jax.random.split(key, 5)

    # Batch large enough that the Pallas path (not the tiny-problem fallback)
    # runs; feature dims stay small and match the module (hidden=20).
    batch, in_num, hidden, out_num = 1024, 32, 20, 16

    x = jax.random.normal(k_x, (batch, in_num), dtype=jnp.float32)
    # PyTorch-Linear parameter shapes: weight (out, in), bias (out,)
    w1 = jax.random.normal(k_w1, (hidden, in_num), dtype=jnp.float32) * 0.1
    b1 = jax.random.normal(k_b1, (hidden,), dtype=jnp.float32) * 0.1
    w2 = jax.random.normal(k_w2, (out_num, hidden), dtype=jnp.float32) * 0.1
    b2 = jax.random.normal(k_b2, (out_num,), dtype=jnp.float32) * 0.1

    fwd = jax.jit(net_task1_forward)
    y = fwd(x, w1, b1, w2, b2)
    jax.block_until_ready(y)

    y_ref = reference_forward(x, w1, b1, w2, b2)
    assert y.shape == (batch, out_num)
    # Algebraic fusion changes f32 rounding slightly vs the two-matmul reference.
    assert jnp.allclose(y, y_ref, atol=1e-4, rtol=1e-4), float(
        jnp.max(jnp.abs(y - y_ref))
    )

    print("KERNEL_OK")
</pallas_src>

<mosaic_0001>
module attributes {stable_mosaic.version = 11 : i64} {
  func.func @fused_linear_kernel(%arg0: i32, %arg1: memref<512x32xf32, #tpu.memory_space<vmem>>, %arg2: memref<32x16xf32, #tpu.memory_space<vmem>>, %arg3: memref<1x16xf32, #tpu.memory_space<vmem>>, %arg4: memref<512x16xf32, #tpu.memory_space<vmem>>) attributes {dimension_semantics = [#tpu.dimension_semantics<parallel>], iteration_bounds = array<i64: 2>, scalar_prefetch = 0 : i64, scratch_operands = 0 : i64, tpu.core_type = #tpu.core_type<tc>, window_params = [{transform_indices = @transform_0, window_bounds = array<i64: 512, 32>}, {pipeline_mode = #tpu.pipeline_mode<synchronous>, transform_indices = @transform_1, window_bounds = array<i64: 32, 16>}, {pipeline_mode = #tpu.pipeline_mode<synchronous>, transform_indices = @transform_2, window_bounds = array<i64: 1, 16>}, {transform_indices = @transform_3, window_bounds = array<i64: 512, 16>}]} {
    %c0 = arith.constant 0 : index
    %c0_0 = arith.constant 0 : index
    %0 = vector.load %arg1[%c0, %c0_0] : memref<512x32xf32, #tpu.memory_space<vmem>>, vector<512x32xf32>
    %c0_1 = arith.constant 0 : index
    %c0_2 = arith.constant 0 : index
    %1 = vector.load %arg2[%c0_1, %c0_2] : memref<32x16xf32, #tpu.memory_space<vmem>>, vector<32x16xf32>
    %cst = arith.constant dense<0.000000e+00> : vector<512x16xf32>
    %2 = tpu.matmul %0, %1, %cst {dimension_numbers = #tpu.dot_dimension_numbers<[1], [0], [0], [1], [0, 0, 1, 1], [], []>} : vector<512x32xf32>, vector<32x16xf32>, vector<512x16xf32> -> vector<512x16xf32>
    %c0_3 = arith.constant 0 : index
    %c0_4 = arith.constant 0 : index
    %3 = vector.load %arg3[%c0_3, %c0_4] : memref<1x16xf32, #tpu.memory_space<vmem>>, vector<1x16xf32>
    %4 = vector.broadcast %3 : vector<1x16xf32> to vector<512x16xf32>
    %5 = arith.addf %2, %4 : vector<512x16xf32>
    %c0_5 = arith.constant 0 : index
    %c0_6 = arith.constant 0 : index
    %6 = vector.load %arg4[%c0_5, %c0_6] : memref<512x16xf32, #tpu.memory_space<vmem>>, vector<512x16xf32>
    tpu.vector_store %arg4[%c0_5, %c0_6], %5 {strides = array<i32>} : memref<512x16xf32, #tpu.memory_space<vmem>>, vector<512x16xf32>,
    return
  }
  func.func @transform_0(%arg0: i32) -> (i32, i32) {
    %c0_i32 = arith.constant 0 : i32
    %c0_i32_0 = arith.constant 0 : i32
    return %arg0, %c0_i32 : i32, i32
  }
  func.func @transform_1(%arg0: i32) -> (i32, i32) {
    %c0_i32 = arith.constant 0 : i32
    %c0_i32_0 = arith.constant 0 : i32
    %c0_i32_1 = arith.constant 0 : i32
    return %c0_i32, %c0_i32_0 : i32, i32
  }
  func.func @transform_2(%arg0: i32) -> (i32, i32) {
    %c0_i32 = arith.constant 0 : i32
    %c0_i32_0 = arith.constant 0 : i32
    %c0_i32_1 = arith.constant 0 : i32
    return %c0_i32, %c0_i32_0 : i32, i32
  }
  func.func @transform_3(%arg0: i32) -> (i32, i32) {
    %c0_i32 = arith.constant 0 : i32
    %c0_i32_0 = arith.constant 0 : i32
    return %arg0, %c0_i32 : i32, i32
  }
}

</mosaic_0001>

<bundles_post_ra>
// kernel: net_task1_forward.1
= control target key start
LH: loop header
LB: loop body
LE: loop exit
PB: predicated region body
PF: predicated region fallthrough
CT: control target
= control target key end

     0   :  { %s893_s12 = smov 0   ;;  %s1258_s0 = inlined_call_operand.vmem [shape: f32[1024,32], index: 0, kind: input, shape index: {}]   ;;  %s1259_s1 = inlined_call_operand.vmem [shape: f32[32,16], index: 1, kind: input, shape index: {}]   ;;  %s1260_s2 = inlined_call_operand.vmem [shape: f32[1,16], index: 2, kind: input, shape index: {}]   ;;  %s1261_s3 = inlined_call_operand.vmem [shape: f32[1024,16], index: 3, kind: output, shape index: {}]  }
   0x1 LB: > { %s769_s13 = sadd.s32 4294967295, %s871_s12   ;;  %p773_p0 = scmp.ge.s32.totalorder %s871_s12, 1  ;;  %s871_s12 = sphi %s893_s12, %s13_s12  }
   0x2   : > { %p138_p1 = scmp.lt.s32.totalorder %s871_s12, 3 }
   0x4   : > { %p139_p2 = pnand %p773_p0, %p138_p1 }
   0x5   : > { %s774_s18 = sshll.u32 (!%p139_p2), %s769_s13, 6 }
   0x6   : > { %142 = sbr.rel (%p139_p2) target bundleno = 275 (0x113), region = 32  ;;  %p163_p3 = scmp.lt.s32.totalorder (!%p139_p2), %s774_s18, 127 }
   0xb   : > { %v241_v0 = vld [vmem:[%s1259_s1 + $0x18] sm:$0xff]  ;;  %v240_v1 = vld [vmem:[%s1259_s1 + $0x10] sm:$0xff]  ;;  %v239_v2 = vld [vmem:[%s1259_s1 + $0x8] sm:$0xff]  ;;  %s1263_s18 = smov (!%p163_p3, %s774_s18), 127  ;;  %vm246_vm0 = vcmask 261120   ;;  %vm648_vm1 = vcmask 130048  }
   0xc   : > { %845 = vmatpush.msra.mxu2 %v241_v0  ;;  %846 = vmatpush.msra.mxu3 %v241_v0  ;;  %v238_v3 = vld [vmem:[%s1259_s1] sm:$0xff]  ;;  %s775_s23 = sshll.u32 %s1263_s18, 3 }
   0xd   : > { %451 = vmatpush.msra.mxu0 %v241_v0  ;;  %844 = vmatpush.msra.mxu1 %v241_v0  ;;  %s921_s26 = scalar_lea.vmem %s1258_s0, %s775_s23  ;;  %s1061_s4 = scalar_lea.vmem %s1261_s3, %s775_s23 }
   0xe   : > { %848 = vmatpush.msra.mxu2 %v240_v1  ;;  %849 = vmatpush.msra.mxu3 %v240_v1  ;;  %v206_v4 = vld [vmem:[%s921_s26 + $0x100] sm:$0xff]  ;;  %v207_v8 = vld [vmem:[%s921_s26 + $0x108] sm:$0xff]  ;;  %v208_v12 = vld [vmem:[%s921_s26 + $0x110] sm:$0xff] }
   0xf   : > { %452 = vmatpush.msra.mxu0 %v240_v1  ;;  %847 = vmatpush.msra.mxu1 %v240_v1  ;;  %v222_v5 = vld [vmem:[%s921_s26 + $0x180] sm:$0xff]  ;;  %v223_v9 = vld [vmem:[%s921_s26 + $0x188] sm:$0xff]  ;;  %v224_v13 = vld [vmem:[%s921_s26 + $0x190] sm:$0xff] }
  0x10   : > { %851 = vmatpush.msra.mxu2 %v239_v2  ;;  %852 = vmatpush.msra.mxu3 %v239_v2  ;;  %v174_v6 = vld [vmem:[%s921_s26] sm:$0xff]  ;;  %v175_v10 = vld [vmem:[%s921_s26 + $0x8] sm:$0xff]  ;;  %v176_v14 = vld [vmem:[%s921_s26 + $0x10] sm:$0xff] }
  0x11   : > { %453 = vmatpush.msra.mxu0 %v239_v2  ;;  %850 = vmatpush.msra.mxu1 %v239_v2  ;;  %v190_v7 = vld [vmem:[%s921_s26 + $0x80] sm:$0xff]  ;;  %v191_v11 = vld [vmem:[%s921_s26 + $0x88] sm:$0xff]  ;;  %v192_v15 = vld [vmem:[%s921_s26 + $0x90] sm:$0xff] }
  0x12   : > { %854 = vmatpush.msra.mxu2 %v238_v3  ;;  %855 = vmatpush.msra.mxu3 %v238_v3  ;;  %v209_v16 = vld [vmem:[%s921_s26 + $0x118] sm:$0xff]  ;;  %v210_v20 = vld [vmem:[%s921_s26 + $0x120] sm:$0xff]  ;;  %v211_v24 = vld [vmem:[%s921_s26 + $0x128] sm:$0xff] }
  0x13   : > { %810 = vmatmul.msk.f32.vlgmr.msra.gmra.mxu2 %vm246_vm0, %v206_v4  ;;  %826 = vmatmul.msk.f32.vlgmr.msra.gmra.mxu3 %vm246_vm0, %v222_v5  ;;  %v225_v17 = vld [vmem:[%s921_s26 + $0x198] sm:$0xff]  ;;  %v226_v21 = vld [vmem:[%s921_s26 + $0x1a0] sm:$0xff]  ;;  %v227_v25 = vld [vmem:[%s921_s26 + $0x1a8] sm:$0xff] }
  0x14   : > { %454 = vmatpush.msra.mxu0 %v238_v3  ;;  %853 = vmatpush.msra.mxu1 %v238_v3  ;;  %v177_v18 = vld [vmem:[%s921_s26 + $0x18] sm:$0xff]  ;;  %v178_v22 = vld [vmem:[%s921_s26 + $0x20] sm:$0xff]  ;;  %v179_v26 = vld [vmem:[%s921_s26 + $0x28] sm:$0xff] }
  0x15   : > { %778 = vmatmul.msk.f32.vlgmr.msra.gmra.mxu0 %vm246_vm0, %v174_v6  ;;  %794 = vmatmul.msk.f32.vlgmr.msra.gmra.mxu1 %vm246_vm0, %v190_v7  ;;  %v193_v19 = vld [vmem:[%s921_s26 + $0x98] sm:$0xff]  ;;  %v194_v23 = vld [vmem:[%s921_s26 + $0xa0] sm:$0xff]  ;;  %v195_v27 = vld [vmem:[%s921_s26 + $0xa8] sm:$0xff] }
  0x16   : > { %v212_v28 = vld [vmem:[%s921_s26 + $0x130] sm:$0xff]  ;;  %v213_v32 = vld [vmem:[%s921_s26 + $0x138] sm:$0xff]  ;;  %v214_v36 = vld [vmem:[%s921_s26 + $0x140] sm:$0xff] }
  0x17   : > { %v228_v29 = vld [vmem:[%s921_s26 + $0x1b0] sm:$0xff]  ;;  %v229_v33 = vld [vmem:[%s921_s26 + $0x1b8] sm:$0xff]  ;;  %v230_v37 = vld [vmem:[%s921_s26 + $0x1c0] sm:$0xff] }
  0x18   : > { %v180_v30 = vld [vmem:[%s921_s26 + $0x30] sm:$0xff]  ;;  %v181_v34 = vld [vmem:[%s921_s26 + $0x38] sm:$0xff]  ;;  %v182_v38 = vld [vmem:[%s921_s26 + $0x40] sm:$0xff] }
  0x19   : > { %v196_v31 = vld [vmem:[%s921_s26 + $0xb0] sm:$0xff]  ;;  %v197_v35 = vld [vmem:[%s921_s26 + $0xb8] sm:$0xff]  ;;  %v198_v39 = vld [vmem:[%s921_s26 + $0xc0] sm:$0xff] }
  0x1a   : > { %v215_v40 = vld [vmem:[%s921_s26 + $0x148] sm:$0xff]  ;;  %v216_v44 = vld [vmem:[%s921_s26 + $0x150] sm:$0xff]  ;;  %v217_v48 = vld [vmem:[%s921_s26 + $0x158] sm:$0xff] }
  0x1b   : > { %811 = vmatmul.msk.f32.gmra.mxu2 %vm246_vm0, %v207_v8  ;;  %827 = vmatmul.msk.f32.gmra.mxu3 %vm246_vm0, %v223_v9  ;;  %v231_v41 = vld [vmem:[%s921_s26 + $0x1c8] sm:$0xff]  ;;  %v232_v45 = vld [vmem:[%s921_s26 + $0x1d0] sm:$0xff]  ;;  %v233_v49 = vld [vmem:[%s921_s26 + $0x1d8] sm:$0xff] }
  0x1c   : > { %v183_v42 = vld [vmem:[%s921_s26 + $0x48] sm:$0xff]  ;;  %v184_v46 = vld [vmem:[%s921_s26 + $0x50] sm:$0xff]  ;;  %v185_v50 = vld [vmem:[%s921_s26 + $0x58] sm:$0xff] }
  0x1d   : > { %779 = vmatmul.msk.f32.gmra.mxu0 %vm246_vm0, %v175_v10  ;;  %795 = vmatmul.msk.f32.gmra.mxu1 %vm246_vm0, %v191_v11  ;;  %v199_v43 = vld [vmem:[%s921_s26 + $0xc8] sm:$0xff]  ;;  %v200_v47 = vld [vmem:[%s921_s26 + $0xd0] sm:$0xff]  ;;  %v201_v51 = vld [vmem:[%s921_s26 + $0xd8] sm:$0xff] }
  0x1e   : > { %v218_v52 = vld [vmem:[%s921_s26 + $0x160] sm:$0xff]  ;;  %v219_v56 = vld [vmem:[%s921_s26 + $0x168] sm:$0xff]  ;;  %v220_v60 = vld [vmem:[%s921_s26 + $0x170] sm:$0xff] }
  0x1f   : > { %v234_v53 = vld [vmem:[%s921_s26 + $0x1e0] sm:$0xff]  ;;  %v235_v57 = vld [vmem:[%s921_s26 + $0x1e8] sm:$0xff]  ;;  %v236_v61 = vld [vmem:[%s921_s26 + $0x1f0] sm:$0xff] }
  0x20   : > { %v186_v54 = vld [vmem:[%s921_s26 + $0x60] sm:$0xff]  ;;  %v187_v58 = vld [vmem:[%s921_s26 + $0x68] sm:$0xff]  ;;  %v188_v62 = vld [vmem:[%s921_s26 + $0x70] sm:$0xff] }
  0x21   : > { %v202_v55 = vld [vmem:[%s921_s26 + $0xe0] sm:$0xff]  ;;  %v203_v59 = vld [vmem:[%s921_s26 + $0xe8] sm:$0xff]  ;;  %v204_v63 = vld [vmem:[%s921_s26 + $0xf0] sm:$0xff] }
  0x22   : > { %v221_v0 = vld [vmem:[%s921_s26 + $0x178] sm:$0xff]  ;;  %v1054_v4 = vld [vmem:[%s1260_s2] ss:$0 sm:$0xff] }
  0x23   : > { %812 = vmatmul.msk.f32.gmra.mxu2 %vm246_vm0, %v208_v12  ;;  %828 = vmatmul.msk.f32.gmra.mxu3 %vm246_vm0, %v224_v13  ;;  %v237_v1 = vld [vmem:[%s921_s26 + $0x1f8] sm:$0xff] }
  0x24   : > { %v189_v2 = vld [vmem:[%s921_s26 + $0x78] sm:$0xff] }
  0x25   : > { %780 = vmatmul.msk.f32.gmra.mxu0 %vm246_vm0, %v176_v14  ;;  %796 = vmatmul.msk.f32.gmra.mxu1 %vm246_vm0, %v192_v15  ;;  %v205_v3 = vld [vmem:[%s921_s26 + $0xf8] sm:$0xff] }
  0x2b   : > { %813 = vmatmul.msk.f32.gmra.mxu2 %vm246_vm0, %v209_v16  ;;  %829 = vmatmul.msk.f32.gmra.mxu3 %vm246_vm0, %v225_v17 }
  0x2d   : > { %781 = vmatmul.msk.f32.gmra.mxu0 %vm246_vm0, %v177_v18  ;;  %797 = vmatmul.msk.f32.gmra.mxu1 %vm246_vm0, %v193_v19 }
  0x33   : > { %814 = vmatmul.msk.f32.gmra.mxu2 %vm246_vm0, %v210_v20  ;;  %830 = vmatmul.msk.f32.gmra.mxu3 %vm246_vm0, %v226_v21 }
  0x35   : > { %782 = vmatmul.msk.f32.gmra.mxu0 %vm246_vm0, %v178_v22  ;;  %798 = vmatmul.msk.f32.gmra.mxu1 %vm246_vm0, %v194_v23 }
  0x3b   : > { %815 = vmatmul.msk.f32.gmra.mxu2 %vm246_vm0, %v211_v24  ;;  %831 = vmatmul.msk.f32.gmra.mxu3 %vm246_vm0, %v227_v25 }
  0x3d   : > { %783 = vmatmul.msk.f32.gmra.mxu0 %vm246_vm0, %v179_v26  ;;  %799 = vmatmul.msk.f32.gmra.mxu1 %vm246_vm0, %v195_v27 }
  0x43   : > { %816 = vmatmul.msk.f32.gmra.mxu2 %vm246_vm0, %v212_v28  ;;  %832 = vmatmul.msk.f32.gmra.mxu3 %vm246_vm0, %v228_v29 }
  0x45   : > { %784 = vmatmul.msk.f32.gmra.mxu0 %vm246_vm0, %v180_v30  ;;  %800 = vmatmul.msk.f32.gmra.mxu1 %vm246_vm0, %v196_v31 }
  0x4b   : > { %817 = vmatmul.msk.f32.gmra.mxu2 %vm246_vm0, %v213_v32  ;;  %833 = vmatmul.msk.f32.gmra.mxu3 %vm246_vm0, %v229_v33 }
  0x4d   : > { %785 = vmatmul.msk.f32.gmra.mxu0 %vm246_vm0, %v181_v34  ;;  %801 = vmatmul.msk.f32.gmra.mxu1 %vm246_vm0, %v197_v35 }
  0x53   : > { %818 = vmatmul.msk.f32.gmra.mxu2 %vm246_vm0, %v214_v36  ;;  %834 = vmatmul.msk.f32.gmra.mxu3 %vm246_vm0, %v230_v37 }
  0x55   : > { %786 = vmatmul.msk.f32.gmra.mxu0 %vm246_vm0, %v182_v38  ;;  %802 = vmatmul.msk.f32.gmra.mxu1 %vm246_vm0, %v198_v39 }
  0x5b   : > { %819 = vmatmul.msk.f32.gmra.mxu2 %vm246_vm0, %v215_v40  ;;  %835 = vmatmul.msk.f32.gmra.mxu3 %vm246_vm0, %v231_v41 }
  0x5d   : > { %787 = vmatmul.msk.f32.gmra.mxu0 %vm246_vm0, %v183_v42  ;;  %803 = vmatmul.msk.f32.gmra.mxu1 %vm246_vm0, %v199_v43 }
  0x63   : > { %820 = vmatmul.msk.f32.gmra.mxu2 %vm246_vm0, %v216_v44  ;;  %836 = vmatmul.msk.f32.gmra.mxu3 %vm246_vm0, %v232_v45 }
  0x65   : > { %788 = vmatmul.msk.f32.gmra.mxu0 %vm246_vm0, %v184_v46  ;;  %804 = vmatmul.msk.f32.gmra.mxu1 %vm246_vm0, %v200_v47 }
  0x6b   : > { %821 = vmatmul.msk.f32.gmra.mxu2 %vm246_vm0, %v217_v48  ;;  %837 = vmatmul.msk.f32.gmra.mxu3 %vm246_vm0, %v233_v49 }
  0x6d   : > { %789 = vmatmul.msk.f32.gmra.mxu0 %vm246_vm0, %v185_v50  ;;  %805 = vmatmul.msk.f32.gmra.mxu1 %vm246_vm0, %v201_v51 }
  0x73   : > { %822 = vmatmul.msk.f32.gmra.mxu2 %vm246_vm0, %v218_v52  ;;  %838 = vmatmul.msk.f32.gmra.mxu3 %vm246_vm0, %v234_v53 }
  0x75   : > { %790 = vmatmul.msk.f32.gmra.mxu0 %vm246_vm0, %v186_v54  ;;  %806 = vmatmul.msk.f32.gmra.mxu1 %vm246_vm0, %v202_v55 }
  0x7b   : > { %823 = vmatmul.msk.f32.gmra.mxu2 %vm246_vm0, %v219_v56  ;;  %839 = vmatmul.msk.f32.gmra.mxu3 %vm246_vm0, %v235_v57 }
  0x7d   : > { %791 = vmatmul.msk.f32.gmra.mxu0 %vm246_vm0, %v187_v58  ;;  %807 = vmatmul.msk.f32.gmra.mxu1 %vm246_vm0, %v203_v59 }
  0x83   : > { %824 = vmatmul.msk.f32.gmra.mxu2 %vm246_vm0, %v220_v60  ;;  %840 = vmatmul.msk.f32.gmra.mxu3 %vm246_vm0, %v236_v61 }
  0x85   : > { %792 = vmatmul.msk.f32.gmra.mxu0 %vm246_vm0, %v188_v62  ;;  %808 = vmatmul.msk.f32.gmra.mxu1 %vm246_vm0, %v204_v63 }
  0x8b   : > { %825 = vmatmul.msk.f32.gmra.mxu2 %vm246_vm0, %v221_v0  ;;  %841 = vmatmul.msk.f32.gmra.mxu3 %vm246_vm0, %v237_v1 }
  0x8d   : > { %793 = vmatmul.msk.f32.gmra.mxu0 %vm246_vm0, %v189_v2  ;;  %809 = vmatmul.msk.f32.gmra.mxu1 %vm246_vm0, %v205_v3 }
  0x92   : > { %v456_v5 = vpop.f32.mrf.mxu0  ;;  %v504_v6 = vpop.f32.mrf.mxu1 }
  0x93   : > { %v457_v7 = vadd.f32 %v1054_v4, %v456_v5  ;;  %v505_v8 = vadd.f32 %v1054_v4, %v504_v6 }
  0x95   : > { %649 = vst.msk [vmem:[%s1061_s4] sm:$0xff] %vm648_vm1, %v457_v7 }
  0x96   : > { %665 = vst.msk [vmem:[%s1061_s4 + $0x80] sm:$0xff] %vm648_vm1, %v505_v8  ;;  %v552_v9 = vpop.f32.mrf.mxu2  ;;  %v600_v10 = vpop.f32.mrf.mxu3 }
  0x97   : > { %v553_v11 = vadd.f32 %v1054_v4, %v552_v9  ;;  %v601_v12 = vadd.f32 %v1054_v4, %v600_v10 }
  0x99   : > { %681 = vst.msk [vmem:[%s1061_s4 + $0x100] sm:$0xff] %vm648_vm1, %v553_v11 }
  0x9a   : > { %697 = vst.msk [vmem:[%s1061_s4 + $0x180] sm:$0xff] %vm648_vm1, %v601_v12  ;;  %v459_v13 = vpop.f32.mrf.mxu0  ;;  %v507_v14 = vpop.f32.mrf.mxu1 }
  0x9b   : > { %v460_v15 = vadd.f32 %v1054_v4, %v459_v13  ;;  %v508_v16 = vadd.f32 %v1054_v4, %v507_v14 }
  0x9d   : > { %650 = vst.msk [vmem:[%s1061_s4 + $0x8] sm:$0xff] %vm648_vm1, %v460_v15 }
  0x9e   : > { %666 = vst.msk [vmem:[%s1061_s4 + $0x88] sm:$0xff] %vm648_vm1, %v508_v16  ;;  %v555_v17 = vpop.f32.mrf.mxu2  ;;  %v603_v18 = vpop.f32.mrf.mxu3 }
  0x9f   : > { %v556_v19 = vadd.f32 %v1054_v4, %v555_v17  ;;  %v604_v20 = vadd.f32 %v1054_v4, %v603_v18 }
  0xa1   : > { %682 = vst.msk [vmem:[%s1061_s4 + $0x108] sm:$0xff] %vm648_vm1, %v556_v19 }
  0xa2   : > { %698 = vst.msk [vmem:[%s1061_s4 + $0x188] sm:$0xff] %vm648_vm1, %v604_v20  ;;  %v462_v21 = vpop.f32.mrf.mxu0  ;;  %v510_v22 = vpop.f32.mrf.mxu1 }
  0xa3   : > { %v463_v23 = vadd.f32 %v1054_v4, %v462_v21  ;;  %v511_v24 = vadd.f32 %v1054_v4, %v510_v22 }
  0xa5   : > { %651 = vst.msk [vmem:[%s1061_s4 + $0x10] sm:$0xff] %vm648_vm1, %v463_v23 }
  0xa6   : > { %667 = vst.msk [vmem:[%s1061_s4 + $0x90] sm:$0xff] %vm648_vm1, %v511_v24  ;;  %v558_v25 = vpop.f32.mrf.mxu2  ;;  %v606_v26 = vpop.f32.mrf.mxu3 }
  0xa7   : > { %v559_v27 = vadd.f32 %v1054_v4, %v558_v25  ;;  %v607_v28 = vadd.f32 %v1054_v4, %v606_v26 }
  0xa9   : > { %683 = vst.msk [vmem:[%s1061_s4 + $0x110] sm:$0xff] %vm648_vm1, %v559_v27 }
  0xaa   : > { %699 = vst.msk [vmem:[%s1061_s4 + $0x190] sm:$0xff] %vm648_vm1, %v607_v28  ;;  %v465_v29 = vpop.f32.mrf.mxu0  ;;  %v513_v30 = vpop.f32.mrf.mxu1 }
  0xab   : > { %v466_v31 = vadd.f32 %v1054_v4, %v465_v29  ;;  %v514_v32 = vadd.f32 %v1054_v4, %v513_v30 }
  0xad   : > { %652 = vst.msk [vmem:[%s1061_s4 + $0x18] sm:$0xff] %vm648_vm1, %v466_v31 }
  0xae   : > { %668 = vst.msk [vmem:[%s1061_s4 + $0x98] sm:$0xff] %vm648_vm1, %v514_v32  ;;  %v561_v33 = vpop.f32.mrf.mxu2  ;;  %v609_v34 = vpop.f32.mrf.mxu3 }
  0xaf   : > { %v562_v35 = vadd.f32 %v1054_v4, %v561_v33  ;;  %v610_v36 = vadd.f32 %v1054_v4, %v609_v34 }
  0xb1   : > { %684 = vst.msk [vmem:[%s1061_s4 + $0x118] sm:$0xff] %vm648_vm1, %v562_v35 }
  0xb2   : > { %700 = vst.msk [vmem:[%s1061_s4 + $0x198] sm:$0xff] %vm648_vm1, %v610_v36  ;;  %v468_v37 = vpop.f32.mrf.mxu0  ;;  %v516_v38 = vpop.f32.mrf.mxu1 }
  0xb3   : > { %v469_v39 = vadd.f32 %v1054_v4, %v468_v37  ;;  %v517_v40 = vadd.f32 %v1054_v4, %v516_v38 }
  0xb5   : > { %653 = vst.msk [vmem:[%s1061_s4 + $0x20] sm:$0xff] %vm648_vm1, %v469_v39 }
  0xb6   : > { %669 = vst.msk [vmem:[%s1061_s4 + $0xa0] sm:$0xff] %vm648_vm1, %v517_v40  ;;  %v564_v41 = vpop.f32.mrf.mxu2  ;;  %v612_v42 = vpop.f32.mrf.mxu3 }
  0xb7   : > { %v565_v43 = vadd.f32 %v1054_v4, %v564_v41  ;;  %v613_v44 = vadd.f32 %v1054_v4, %v612_v42 }
  0xb9   : > { %685 = vst.msk [vmem:[%s1061_s4 + $0x120] sm:$0xff] %vm648_vm1, %v565_v43 }
  0xba   : > { %701 = vst.msk [vmem:[%s1061_s4 + $0x1a0] sm:$0xff] %vm648_vm1, %v613_v44  ;;  %v471_v45 = vpop.f32.mrf.mxu0  ;;  %v519_v46 = vpop.f32.mrf.mxu1 }
  0xbb   : > { %v472_v47 = vadd.f32 %v1054_v4, %v471_v45  ;;  %v520_v48 = vadd.f32 %v1054_v4, %v519_v46 }
  0xbd   : > { %654 = vst.msk [vmem:[%s1061_s4 + $0x28] sm:$0xff] %vm648_vm1, %v472_v47 }
  0xbe   : > { %670 = vst.msk [vmem:[%s1061_s4 + $0xa8] sm:$0xff] %vm648_vm1, %v520_v48  ;;  %v567_v49 = vpop.f32.mrf.mxu2  ;;  %v615_v50 = vpop.f32.mrf.mxu3 }
  0xbf   : > { %v568_v51 = vadd.f32 %v1054_v4, %v567_v49  ;;  %v616_v52 = vadd.f32 %v1054_v4, %v615_v50 }
  0xc1   : > { %686 = vst.msk [vmem:[%s1061_s4 + $0x128] sm:$0xff] %vm648_vm1, %v568_v51 }
  0xc2   : > { %702 = vst.msk [vmem:[%s1061_s4 + $0x1a8] sm:$0xff] %vm648_vm1, %v616_v52  ;;  %v474_v53 = vpop.f32.mrf.mxu0  ;;  %v522_v54 = vpop.f32.mrf.mxu1 }
  0xc3   : > { %v475_v55 = vadd.f32 %v1054_v4, %v474_v53  ;;  %v523_v56 = vadd.f32 %v1054_v4, %v522_v54 }
  0xc5   : > { %655 = vst.msk [vmem:[%s1061_s4 + $0x30] sm:$0xff] %vm648_vm1, %v475_v55 }
  0xc6   : > { %671 = vst.msk [vmem:[%s1061_s4 + $0xb0] sm:$0xff] %vm648_vm1, %v523_v56  ;;  %v570_v57 = vpop.f32.mrf.mxu2  ;;  %v618_v58 = vpop.f32.mrf.mxu3 }
  0xc7   : > { %v571_v59 = vadd.f32 %v1054_v4, %v570_v57  ;;  %v619_v60 = vadd.f32 %v1054_v4, %v618_v58 }
  0xc9   : > { %687 = vst.msk [vmem:[%s1061_s4 + $0x130] sm:$0xff] %vm648_vm1, %v571_v59 }
  0xca   : > { %703 = vst.msk [vmem:[%s1061_s4 + $0x1b0] sm:$0xff] %vm648_vm1, %v619_v60  ;;  %v477_v61 = vpop.f32.mrf.mxu0  ;;  %v525_v62 = vpop.f32.mrf.mxu1 }
  0xcb   : > { %v478_v63 = vadd.f32 %v1054_v4, %v477_v61  ;;  %v526_v0 = vadd.f32 %v1054_v4, %v525_v62 }
  0xcd   : > { %656 = vst.msk [vmem:[%s1061_s4 + $0x38] sm:$0xff] %vm648_vm1, %v478_v63 }
  0xce   : > { %672 = vst.msk [vmem:[%s1061_s4 + $0xb8] sm:$0xff] %vm648_vm1, %v526_v0  ;;  %v573_v1 = vpop.f32.mrf.mxu2  ;;  %v621_v2 = vpop.f32.mrf.mxu3 }
  0xcf   : > { %v574_v3 = vadd.f32 %v1054_v4, %v573_v1  ;;  %v622_v5 = vadd.f32 %v1054_v4, %v621_v2 }
  0xd1   : > { %688 = vst.msk [vmem:[%s1061_s4 + $0x138] sm:$0xff] %vm648_vm1, %v574_v3 }
  0xd2   : > { %704 = vst.msk [vmem:[%s1061_s4 + $0x1b8] sm:$0xff] %vm648_vm1, %v622_v5  ;;  %v480_v6 = vpop.f32.mrf.mxu0  ;;  %v528_v7 = vpop.f32.mrf.mxu1 }
  0xd3   : > { %v481_v8 = vadd.f32 %v1054_v4, %v480_v6  ;;  %v529_v9 = vadd.f32 %v1054_v4, %v528_v7 }
  0xd5   : > { %657 = vst.msk [vmem:[%s1061_s4 + $0x40] sm:$0xff] %vm648_vm1, %v481_v8 }
  0xd6   : > { %673 = vst.msk [vmem:[%s1061_s4 + $0xc0] sm:$0xff] %vm648_vm1, %v529_v9  ;;  %v576_v10 = vpop.f32.mrf.mxu2  ;;  %v624_v11 = vpop.f32.mrf.mxu3 }
  0xd7   : > { %v577_v12 = vadd.f32 %v1054_v4, %v576_v10  ;;  %v625_v13 = vadd.f32 %v1054_v4, %v624_v11 }
  0xd9   : > { %689 = vst.msk [vmem:[%s1061_s4 + $0x140] sm:$0xff] %vm648_vm1, %v577_v12 }
  0xda   : > { %705 = vst.msk [vmem:[%s1061_s4 + $0x1c0] sm:$0xff] %vm648_vm1, %v625_v13  ;;  %v483_v14 = vpop.f32.mrf.mxu0  ;;  %v531_v15 = vpop.f32.mrf.mxu1 }
  0xdb   : > { %v484_v16 = vadd.f32 %v1054_v4, %v483_v14  ;;  %v532_v17 = vadd.f32 %v1054_v4, %v531_v15 }
  0xdd   : > { %658 = vst.msk [vmem:[%s1061_s4 + $0x48] sm:$0xff] %vm648_vm1, %v484_v16 }
  0xde   : > { %674 = vst.msk [vmem:[%s1061_s4 + $0xc8] sm:$0xff] %vm648_vm1, %v532_v17  ;;  %v579_v18 = vpop.f32.mrf.mxu2  ;;  %v627_v19 = vpop.f32.mrf.mxu3 }
  0xdf   : > { %v580_v20 = vadd.f32 %v1054_v4, %v579_v18  ;;  %v628_v21 = vadd.f32 %v1054_v4, %v627_v19 }
  0xe1   : > { %690 = vst.msk [vmem:[%s1061_s4 + $0x148] sm:$0xff] %vm648_vm1, %v580_v20 }
  0xe2   : > { %706 = vst.msk [vmem:[%s1061_s4 + $0x1c8] sm:$0xff] %vm648_vm1, %v628_v21  ;;  %v486_v22 = vpop.f32.mrf.mxu0  ;;  %v534_v23 = vpop.f32.mrf.mxu1 }
  0xe3   : > { %v487_v24 = vadd.f32 %v1054_v4, %v486_v22  ;;  %v535_v25 = vadd.f32 %v1054_v4, %v534_v23 }
  0xe5   : > { %659 = vst.msk [vmem:[%s1061_s4 + $0x50] sm:$0xff] %vm648_vm1, %v487_v24 }
  0xe6   : > { %675 = vst.msk [vmem:[%s1061_s4 + $0xd0] sm:$0xff] %vm648_vm1, %v535_v25  ;;  %v582_v26 = vpop.f32.mrf.mxu2  ;;  %v630_v27 = vpop.f32.mrf.mxu3 }
  0xe7   : > { %v583_v28 = vadd.f32 %v1054_v4, %v582_v26  ;;  %v631_v29 = vadd.f32 %v1054_v4, %v630_v27 }
  0xe9   : > { %691 = vst.msk [vmem:[%s1061_s4 + $0x150] sm:$0xff] %vm648_vm1, %v583_v28 }
  0xea   : > { %707 = vst.msk [vmem:[%s1061_s4 + $0x1d0] sm:$0xff] %vm648_vm1, %v631_v29  ;;  %v489_v30 = vpop.f32.mrf.mxu0  ;;  %v537_v31 = vpop.f32.mrf.mxu1 }
  0xeb   : > { %v490_v32 = vadd.f32 %v1054_v4, %v489_v30  ;;  %v538_v33 = vadd.f32 %v1054_v4, %v537_v31 }
  0xed   : > { %660 = vst.msk [vmem:[%s1061_s4 + $0x58] sm:$0xff] %vm648_vm1, %v490_v32 }
  0xee   : > { %676 = vst.msk [vmem:[%s1061_s4 + $0xd8] sm:$0xff] %vm648_vm1, %v538_v33  ;;  %v585_v34 = vpop.f32.mrf.mxu2  ;;  %v633_v35 = vpop.f32.mrf.mxu3 }
  0xef   : > { %v586_v36 = vadd.f32 %v1054_v4, %v585_v34  ;;  %v634_v37 = vadd.f32 %v1054_v4, %v633_v35 }
  0xf1   : > { %692 = vst.msk [vmem:[%s1061_s4 + $0x158] sm:$0xff] %vm648_vm1, %v586_v36 }
  0xf2   : > { %708 = vst.msk [vmem:[%s1061_s4 + $0x1d8] sm:$0xff] %vm648_vm1, %v634_v37  ;;  %v492_v38 = vpop.f32.mrf.mxu0  ;;  %v540_v39 = vpop.f32.mrf.mxu1 }
  0xf3   : > { %v493_v40 = vadd.f32 %v1054_v4, %v492_v38  ;;  %v541_v41 = vadd.f32 %v1054_v4, %v540_v39 }
  0xf5   : > { %661 = vst.msk [vmem:[%s1061_s4 + $0x60] sm:$0xff] %vm648_vm1, %v493_v40 }
  0xf6   : > { %677 = vst.msk [vmem:[%s1061_s4 + $0xe0] sm:$0xff] %vm648_vm1, %v541_v41  ;;  %v588_v42 = vpop.f32.mrf.mxu2  ;;  %v636_v43 = vpop.f32.mrf.mxu3 }
  0xf7   : > { %v589_v44 = vadd.f32 %v1054_v4, %v588_v42  ;;  %v637_v45 = vadd.f32 %v1054_v4, %v636_v43 }
  0xf9   : > { %693 = vst.msk [vmem:[%s1061_s4 + $0x160] sm:$0xff] %vm648_vm1, %v589_v44 }
  0xfa   : > { %709 = vst.msk [vmem:[%s1061_s4 + $0x1e0] sm:$0xff] %vm648_vm1, %v637_v45  ;;  %v495_v46 = vpop.f32.mrf.mxu0  ;;  %v543_v47 = vpop.f32.mrf.mxu1 }
  0xfb   : > { %v496_v48 = vadd.f32 %v1054_v4, %v495_v46  ;;  %v544_v49 = vadd.f32 %v1054_v4, %v543_v47 }
  0xfd   : > { %662 = vst.msk [vmem:[%s1061_s4 + $0x68] sm:$0xff] %vm648_vm1, %v496_v48 }
  0xfe   : > { %678 = vst.msk [vmem:[%s1061_s4 + $0xe8] sm:$0xff] %vm648_vm1, %v544_v49  ;;  %v591_v50 = vpop.f32.mrf.mxu2  ;;  %v639_v51 = vpop.f32.mrf.mxu3 }
  0xff   : > { %v592_v52 = vadd.f32 %v1054_v4, %v591_v50  ;;  %v640_v53 = vadd.f32 %v1054_v4, %v639_v51 }
 0x101   : > { %694 = vst.msk [vmem:[%s1061_s4 + $0x168] sm:$0xff] %vm648_vm1, %v592_v52 }
 0x102   : > { %710 = vst.msk [vmem:[%s1061_s4 + $0x1e8] sm:$0xff] %vm648_vm1, %v640_v53  ;;  %v498_v54 = vpop.f32.mrf.mxu0  ;;  %v546_v55 = vpop.f32.mrf.mxu1 }
 0x103   : > { %v499_v56 = vadd.f32 %v1054_v4, %v498_v54  ;;  %v547_v57 = vadd.f32 %v1054_v4, %v546_v55 }
 0x105   : > { %663 = vst.msk [vmem:[%s1061_s4 + $0x70] sm:$0xff] %vm648_vm1, %v499_v56 }
 0x106   : > { %679 = vst.msk [vmem:[%s1061_s4 + $0xf0] sm:$0xff] %vm648_vm1, %v547_v57  ;;  %v594_v58 = vpop.f32.mrf.mxu2  ;;  %v642_v59 = vpop.f32.mrf.mxu3 }
 0x107   : > { %v595_v60 = vadd.f32 %v1054_v4, %v594_v58  ;;  %v643_v61 = vadd.f32 %v1054_v4, %v642_v59 }
 0x109   : > { %695 = vst.msk [vmem:[%s1061_s4 + $0x170] sm:$0xff] %vm648_vm1, %v595_v60 }
 0x10a   : > { %711 = vst.msk [vmem:[%s1061_s4 + $0x1f0] sm:$0xff] %vm648_vm1, %v643_v61  ;;  %v501_v62 = vpop.f32.mrf.mxu0  ;;  %v549_v63 = vpop.f32.mrf.mxu1 }
 0x10b   : > { %v502_v0 = vadd.f32 %v1054_v4, %v501_v62  ;;  %v550_v1 = vadd.f32 %v1054_v4, %v549_v63 }
 0x10d   : > { %664 = vst.msk [vmem:[%s1061_s4 + $0x78] sm:$0xff] %vm648_vm1, %v502_v0 }
 0x10e   : > { %680 = vst.msk [vmem:[%s1061_s4 + $0xf8] sm:$0xff] %vm648_vm1, %v550_v1  ;;  %v597_v2 = vpop.f32.mrf.mxu2  ;;  %v645_v3 = vpop.f32.mrf.mxu3 }
 0x10f   : > { %v598_v5 = vadd.f32 %v1054_v4, %v597_v2  ;;  %v646_v6 = vadd.f32 %v1054_v4, %v645_v3 }
 0x111   : > { %696 = vst.msk [vmem:[%s1061_s4 + $0x178] sm:$0xff] %vm648_vm1, %v598_v5 }
 0x112   : > { %712 = vst.msk [vmem:[%s1061_s4 + $0x1f8] sm:$0xff] %vm648_vm1, %v646_v6 }
 0x113 PF: > { %s13_s12 = sadd.s32 1, %s871_s12  }
 0x114   : > { %p10_p4 = scmp.ge.s32.totalorder %s13_s12, 4  }
 0x116   :  { %12 = sbr.rel (!%p10_p4) target bundleno = 1 (0x1), region = 62 }

</bundles_post_ra>
